<compile_context>
chip_gen: v7x
topology: tpu7x:2x2x1
jax: 0.10.0
libtpu: 0.0.40
codegen_flags: <defaults>
</compile_context>

<pallas_src>
import jax
import jax.numpy as jnp
from jax import lax
from jax.experimental import pallas as pl
from jax.experimental.pallas import tpu as pltpu

LN_EPS = 1e-5            # nn.LayerNorm default eps

_MAX_BLOCK_ROWS = 512    # 512-row tiles already reach ~85% of HBM roofline
_MIN_GRID_STEPS = 4      # let v7x's two TensorCores each see >= 2 row blocks


def _round_up(a, m):
    return ((a + m - 1) // m) * m


def _vmem_budgets():
    """(vmem_limit_bytes, tile_budget_bytes) sized from this chip's VMEM."""
    try:
        cap = int(pltpu.get_tpu_info().vmem_capacity_bytes)
    except Exception:
        cap = 64 * 1024 * 1024  # conservative fallback = v7x per-core VMEM
    vmem_limit = min(int(cap * 0.65), 100 * 1024 * 1024)
    tile_budget = min(vmem_limit // 3, 16 * 1024 * 1024)
    return vmem_limit, tile_budget


def _ln_rows(x, g, b):
    """LayerNorm each row of a (rows, D) tile. Stats in f32, gamma folded into inv."""
    x32 = x.astype(jnp.float32)
    mean = jnp.mean(x32, axis=-1, keepdims=True)
    centered = x32 - mean
    var = jnp.mean(centered * centered, axis=-1, keepdims=True)
    inv = lax.rsqrt(var + LN_EPS)
    return centered * (inv * g.astype(jnp.float32)) + b.astype(jnp.float32)


def _make_fused_kernel(combine):
    """LN(x), LN(x2) and a shape-preserving elementwise combine in one launch."""
    def kernel(x_ref, x2_ref, g1_ref, b1_ref, g2_ref, b2_ref, o_ref):
        y1 = _ln_rows(x_ref[...], g1_ref[...], b1_ref[...])
        y2 = _ln_rows(x2_ref[...], g2_ref[...], b2_ref[...])
        o_ref[...] = combine(y1, y2).astype(o_ref.dtype)
    return kernel


def _dual_layernorm_kernel(x_ref, x2_ref, g1_ref, b1_ref, g2_ref, b2_ref,
                           o1_ref, o2_ref):
    # Both LayerNorms in one launch; heavyweight fn is applied outside.
    o1_ref[...] = _ln_rows(x_ref[...], g1_ref[...], b1_ref[...]).astype(o1_ref.dtype)
    o2_ref[...] = _ln_rows(x2_ref[...], g2_ref[...], b2_ref[...]).astype(o2_ref.dtype)


def _choose_block_rows(R, D, in_itemsizes, n_out, out_itemsize, fused, tile_budget):
    """Largest sublane-aligned row tile whose double-buffered DMA streams plus
    in-kernel f32 intermediates fit the budget, capped so the row grid keeps
    enough steps for megacore sharding."""
    # Sublane packing: 8 rows per vreg for f32, 16 for bf16, 32 for int8/fp8.
    min_itemsize = min(list(in_itemsizes) + [out_itemsize])
    sub = 8 * max(1, 4 // max(min_itemsize, 1))

    dma_per_row = 2 * D * (sum(in_itemsizes) + n_out * out_itemsize)  # 2x: double buffer
    f32_scratch_per_row = (4 if fused else 5) * 4 * D                 # x32/centered/y's
    per_row = dma_per_row + f32_scratch_per_row

    br = tile_budget // max(per_row, 1)
    br = min(br, _MAX_BLOCK_ROWS)
    br = min(br, _round_up(pl.cdiv(R, _MIN_GRID_STEPS), sub))  # keep >= ~4 grid steps
    br = min(br, _round_up(R, sub))                            # never larger than needed
    br = max((br // sub) * sub, sub)
    return br


def _run_prenorm2(x, x2, g1, b1, g2, b2, *, combine=None, block_rows=None):
    assert x.shape == x2.shape, "x and x2 must share a shape"
    orig_shape = x.shape
    D = orig_shape[-1]
    x2d = x.reshape(-1, D)
    z2d = x2.reshape(-1, D)
    R = x2d.shape[0]

    fused = combine is not None
    n_out = 1 if fused else 2
    out_dtype = jnp.promote_types(x.dtype, x2.dtype)
    out_itemsize = out_dtype.itemsize

    vmem_limit, tile_budget = _vmem_budgets()
    if block_rows is None:
        block_rows = _choose_block_rows(
            R, D, (x.dtype.itemsize, x2.dtype.itemsize),
            n_out, out_itemsize, fused, tile_budget)

    g1r, b1r = g1.reshape(1, D), b1.reshape(1, D)
    g2r, b2r = g2.reshape(1, D), b2.reshape(1, D)

    # TODO(synk): when D % 128 != 0 (e.g. the D=32 demo) output stores are
    # lane-masked (vst.msk) and up to (1 - D/128) of lane bandwidth is idle; the
    # fix is folding k = 128 // D rows into the lane axis (host reshape plus an
    # in-kernel per-segment reduction). D that is a multiple of 128 already hits
    # the lane-dense fast path.
    row_spec = pl.BlockSpec((block_rows, D), lambda i: (i, 0))
    par_spec = pl.BlockSpec((1, D), lambda i: (0, 0))
    # No padding / slicing: cdiv grid + Pallas-masked ragged tail block. Writes
    # past row R are dropped; garbage read into tail rows stays contained
    # because LayerNorm and the combine are strictly per-row / elementwise.
    grid = (pl.cdiv(R, block_rows),)

    if fused:
        kernel = _make_fused_kernel(combine)
        out_shape = jax.ShapeDtypeStruct((R, D), out_dtype)
        out_specs = row_spec
    else:
        kernel = _dual_layernorm_kernel
        out_shape = (jax.ShapeDtypeStruct((R, D), x.dtype),
                     jax.ShapeDtypeStruct((R, D), x2.dtype))
        out_specs = (row_spec, row_spec)

    in_bytes = R * D * (x.dtype.itemsize + x2.dtype.itemsize) + 4 * D * g1r.dtype.itemsize
    out_bytes = R * D * out_itemsize if fused else \
        R * D * (x.dtype.itemsize + x2.dtype.itemsize)
    cost = pl.CostEstimate(
        flops=18 * R * D,        # ~8 VPU ops/elem per LN stream + combine
        transcendentals=2 * R,   # one rsqrt per row per stream
        bytes_accessed=in_bytes + out_bytes)

    out = pl.pallas_call(
        kernel,
        out_shape=out_shape,
        grid_spec=pltpu.PrefetchScalarGridSpec(
            num_scalar_prefetch=0,
            grid=grid,
            in_specs=[row_spec, row_spec, par_spec, par_spec, par_spec, par_spec],
            out_specs=out_specs,
        ),
        compiler_params=pltpu.CompilerParams(
            dimension_semantics=("parallel",),   # independent row blocks -> megacore
            vmem_limit_bytes=vmem_limit,
        ),
        cost_estimate=cost,
    )(x2d, z2d, g1r, b1r, g2r, b2r)

    if fused:
        return out.reshape(orig_shape)
    y1, y2 = out
    return y1.reshape(orig_shape), y2.reshape(orig_shape)


class PreNorm2:
    """JAX/Pallas equivalent of the PyTorch PreNorm2 module: fn(LN(x), LN2(x2)).

    fn=None       -> elementwise add, fully fused into one pallas_call.
    fuse_fn=True  -> fn is a cheap, jax-traceable, shape-preserving elementwise
                     callable of (y1, y2) (kwargs static); it is applied inside
                     the kernel so only one R*D tensor is written to HBM.
    otherwise     -> one pallas_call emits both normalized streams and fn
                     (e.g. cross-attention) runs as ordinary JAX on top.
    """

    def __init__(self, dim, fn=None, dtype=jnp.float32, fuse_fn=False):
        # nn.LayerNorm default init: weight = ones, bias = zeros (deterministic).
        self.gamma1 = jnp.ones((dim,), dtype)
        self.beta1 = jnp.zeros((dim,), dtype)
        self.gamma2 = jnp.ones((dim,), dtype)
        self.beta2 = jnp.zeros((dim,), dtype)
        self.fn = fn
        self.fuse_fn = fuse_fn

    def __call__(self, x, x2, **kwargs):
        if self.fn is None:
            combine = lambda a, b: a + b
        elif self.fuse_fn:
            fn = self.fn
            # NOTE: fused kwargs must be static; array-valued kwargs require
            # the dual-output path (fuse_fn=False).
            combine = (lambda a, b: fn(a, b, **kwargs)) if kwargs else fn
        else:
            combine = None

        if combine is not None:
            return _run_prenorm2(x, x2, self.gamma1, self.beta1,
                                 self.gamma2, self.beta2, combine=combine)
        # TODO(synk): in the original model `fn` is an injected submodule
        # (e.g. cross-attention); only the PreNorm2 wrapper (the two LayerNorms)
        # is kernelized here, fn stays a user-supplied JAX callable.
        y1, y2 = _run_prenorm2(x, x2, self.gamma1, self.beta1,
                               self.gamma2, self.beta2, combine=None)
        return self.fn(y1, y2, **kwargs)


def _reference_layernorm(x, gamma, beta):
    x32 = x.astype(jnp.float32)
    mean = jnp.mean(x32, axis=-1, keepdims=True)
    var = jnp.mean((x32 - mean) ** 2, axis=-1, keepdims=True)
    return ((x32 - mean) / jnp.sqrt(var + LN_EPS)) * gamma + beta


if __name__ == "__main__":
    B, N, D = 2, 8, 32
    key = jax.random.PRNGKey(0)
    k1, k2, k3, k4, k5, k6 = jax.random.split(key, 6)
    x = jax.random.normal(k1, (B, N, D), jnp.float32)
    x2 = jax.random.normal(k2, (B, N, D), jnp.float32)

    # Path 1: default fn (elementwise add) fused into a single pallas_call.
    module = PreNorm2(D)
    out = jax.block_until_ready(module(x, x2))
    ref = (_reference_layernorm(x, module.gamma1, module.beta1)
           + _reference_layernorm(x2, module.gamma2, module.beta2))
    assert out.shape == (B, N, D)
    assert jnp.allclose(out, ref, atol=2e-5, rtol=2e-5)

    # Path 2: cheap elementwise fn fused in-kernel. Non-multiple-of-8 token
    # count exercises the unpadded ragged tail (masked boundary block).
    module2 = PreNorm2(D, fn=lambda a, b: a * 0.5 + b, fuse_fn=True)
    N2 = 7
    xa = jax.random.normal(k3, (B, N2, D), jnp.float32)
    xb = jax.random.normal(k4, (B, N2, D), jnp.float32)
    out2 = jax.block_until_ready(module2(xa, xb))
    ref2 = (_reference_layernorm(xa, module2.gamma1, module2.beta1) * 0.5
            + _reference_layernorm(xb, module2.gamma2, module2.beta2))
    assert out2.shape == (B, N2, D)
    assert jnp.allclose(out2, ref2, atol=2e-5, rtol=2e-5)

    # Path 3: heavyweight fn (cross-attention-style scores) -> dual-output
    # LayerNorm kernel, fn stays ordinary JAX.
    attn_like = lambda a, b: jnp.einsum('bnd,bmd->bnm', a, b)
    module3 = PreNorm2(D, fn=attn_like)
    N3 = 5
    xc = jax.random.normal(k5, (B, N3, D), jnp.float32)
    xd = jax.random.normal(k6, (B, N3, D), jnp.float32)
    out3 = jax.block_until_ready(module3(xc, xd))
    ref3 = attn_like(_reference_layernorm(xc, module3.gamma1, module3.beta1),
                     _reference_layernorm(xd, module3.gamma2, module3.beta2))
    assert out3.shape == (B, N3, N3)
    assert jnp.allclose(out3, ref3, atol=1e-4, rtol=1e-4)

    print("KERNEL_OK")
</pallas_src>

<mosaic_0001>
module attributes {stable_mosaic.version = 11 : i64} {
  func.func @kernel(%arg0: i32, %arg1: memref<8x32xf32, #tpu.memory_space<vmem>>, %arg2: memref<8x32xf32, #tpu.memory_space<vmem>>, %arg3: memref<1x32xf32, #tpu.memory_space<vmem>>, %arg4: memref<1x32xf32, #tpu.memory_space<vmem>>, %arg5: memref<1x32xf32, #tpu.memory_space<vmem>>, %arg6: memref<1x32xf32, #tpu.memory_space<vmem>>, %arg7: memref<8x32xf32, #tpu.memory_space<vmem>>) attributes {dimension_semantics = [#tpu.dimension_semantics<parallel>], iteration_bounds = array<i64: 2>, scalar_prefetch = 0 : i64, scratch_operands = 0 : i64, tpu.core_type = #tpu.core_type<tc>, window_params = [{transform_indices = @transform_0, window_bounds = array<i64: 8, 32>}, {transform_indices = @transform_1, window_bounds = array<i64: 8, 32>}, {pipeline_mode = #tpu.pipeline_mode<synchronous>, transform_indices = @transform_2, window_bounds = array<i64: 1, 32>}, {pipeline_mode = #tpu.pipeline_mode<synchronous>, transform_indices = @transform_3, window_bounds = array<i64: 1, 32>}, {pipeline_mode = #tpu.pipeline_mode<synchronous>, transform_indices = @transform_4, window_bounds = array<i64: 1, 32>}, {pipeline_mode = #tpu.pipeline_mode<synchronous>, transform_indices = @transform_5, window_bounds = array<i64: 1, 32>}, {transform_indices = @transform_6, window_bounds = array<i64: 8, 32>}]} {
    %c0 = arith.constant 0 : index
    %c0_0 = arith.constant 0 : index
    %0 = vector.load %arg1[%c0, %c0_0] : memref<8x32xf32, #tpu.memory_space<vmem>>, vector<8x32xf32>
    %c0_1 = arith.constant 0 : index
    %c0_2 = arith.constant 0 : index
    %1 = vector.load %arg3[%c0_1, %c0_2] : memref<1x32xf32, #tpu.memory_space<vmem>>, vector<1x32xf32>
    %c0_3 = arith.constant 0 : index
    %c0_4 = arith.constant 0 : index
    %2 = vector.load %arg4[%c0_3, %c0_4] : memref<1x32xf32, #tpu.memory_space<vmem>>, vector<1x32xf32>
    %cst = arith.constant dense<0.000000e+00> : vector<8xf32>
    %3 = vector.multi_reduction <add>, %0, %cst [1] : vector<8x32xf32> to vector<8xf32>
    %4 = vector.shape_cast %3 : vector<8xf32> to vector<8x1xf32>
    %cst_5 = arith.constant 3.200000e+01 : f32
    %5 = vector.broadcast %cst_5 : f32 to vector<8x1xf32>
    %6 = arith.divf %4, %5 : vector<8x1xf32>
    %7 = vector.broadcast %6 : vector<8x1xf32> to vector<8x32xf32>
    %8 = arith.subf %0, %7 : vector<8x32xf32>
    %9 = arith.mulf %8, %8 : vector<8x32xf32>
    %cst_6 = arith.constant dense<0.000000e+00> : vector<8xf32>
    %10 = vector.multi_reduction <add>, %9, %cst_6 [1] : vector<8x32xf32> to vector<8xf32>
    %11 = vector.shape_cast %10 : vector<8xf32> to vector<8x1xf32>
    %cst_7 = arith.constant 3.200000e+01 : f32
    %12 = vector.broadcast %cst_7 : f32 to vector<8x1xf32>
    %13 = arith.divf %11, %12 : vector<8x1xf32>
    %cst_8 = arith.constant 9.99999974E-6 : f32
    %14 = vector.broadcast %cst_8 : f32 to vector<8x1xf32>
    %15 = arith.addf %13, %14 : vector<8x1xf32>
    %16 = math.rsqrt %15 : vector<8x1xf32>
    %17 = vector.broadcast %16 : vector<8x1xf32> to vector<8x32xf32>
    %18 = vector.broadcast %1 : vector<1x32xf32> to vector<8x32xf32>
    %19 = arith.mulf %17, %18 : vector<8x32xf32>
    %20 = arith.mulf %8, %19 : vector<8x32xf32>
    %21 = vector.broadcast %2 : vector<1x32xf32> to vector<8x32xf32>
    %22 = arith.addf %20, %21 : vector<8x32xf32>
    %c0_9 = arith.constant 0 : index
    %c0_10 = arith.constant 0 : index
    %23 = vector.load %arg2[%c0_9, %c0_10] : memref<8x32xf32, #tpu.memory_space<vmem>>, vector<8x32xf32>
    %c0_11 = arith.constant 0 : index
    %c0_12 = arith.constant 0 : index
    %24 = vector.load %arg5[%c0_11, %c0_12] : memref<1x32xf32, #tpu.memory_space<vmem>>, vector<1x32xf32>
    %c0_13 = arith.constant 0 : index
    %c0_14 = arith.constant 0 : index
    %25 = vector.load %arg6[%c0_13, %c0_14] : memref<1x32xf32, #tpu.memory_space<vmem>>, vector<1x32xf32>
    %cst_15 = arith.constant dense<0.000000e+00> : vector<8xf32>
    %26 = vector.multi_reduction <add>, %23, %cst_15 [1] : vector<8x32xf32> to vector<8xf32>
    %27 = vector.shape_cast %26 : vector<8xf32> to vector<8x1xf32>
    %cst_16 = arith.constant 3.200000e+01 : f32
    %28 = vector.broadcast %cst_16 : f32 to vector<8x1xf32>
    %29 = arith.divf %27, %28 : vector<8x1xf32>
    %30 = vector.broadcast %29 : vector<8x1xf32> to vector<8x32xf32>
    %31 = arith.subf %23, %30 : vector<8x32xf32>
    %32 = arith.mulf %31, %31 : vector<8x32xf32>
    %cst_17 = arith.constant dense<0.000000e+00> : vector<8xf32>
    %33 = vector.multi_reduction <add>, %32, %cst_17 [1] : vector<8x32xf32> to vector<8xf32>
    %34 = vector.shape_cast %33 : vector<8xf32> to vector<8x1xf32>
    %cst_18 = arith.constant 3.200000e+01 : f32
    %35 = vector.broadcast %cst_18 : f32 to vector<8x1xf32>
    %36 = arith.divf %34, %35 : vector<8x1xf32>
    %cst_19 = arith.constant 9.99999974E-6 : f32
    %37 = vector.broadcast %cst_19 : f32 to vector<8x1xf32>
    %38 = arith.addf %36, %37 : vector<8x1xf32>
    %39 = math.rsqrt %38 : vector<8x1xf32>
    %40 = vector.broadcast %39 : vector<8x1xf32> to vector<8x32xf32>
    %41 = vector.broadcast %24 : vector<1x32xf32> to vector<8x32xf32>
    %42 = arith.mulf %40, %41 : vector<8x32xf32>
    %43 = arith.mulf %31, %42 : vector<8x32xf32>
    %44 = vector.broadcast %25 : vector<1x32xf32> to vector<8x32xf32>
    %45 = arith.addf %43, %44 : vector<8x32xf32>
    %46 = arith.addf %22, %45 : vector<8x32xf32>
    %c0_20 = arith.constant 0 : index
    %c0_21 = arith.constant 0 : index
    %47 = vector.load %arg7[%c0_20, %c0_21] : memref<8x32xf32, #tpu.memory_space<vmem>>, vector<8x32xf32>
    tpu.vector_store %arg7[%c0_20, %c0_21], %46 {strides = array<i32>} : memref<8x32xf32, #tpu.memory_space<vmem>>, vector<8x32xf32>,
    return
  }
  func.func @transform_0(%arg0: i32) -> (i32, i32) {
    %c0_i32 = arith.constant 0 : i32
    %c0_i32_0 = arith.constant 0 : i32
    return %arg0, %c0_i32 : i32, i32
  }
  func.func @transform_1(%arg0: i32) -> (i32, i32) {
    %c0_i32 = arith.constant 0 : i32
    %c0_i32_0 = arith.constant 0 : i32
    return %arg0, %c0_i32 : i32, i32
  }
  func.func @transform_2(%arg0: i32) -> (i32, i32) {
    %c0_i32 = arith.constant 0 : i32
    %c0_i32_0 = arith.constant 0 : i32
    %c0_i32_1 = arith.constant 0 : i32
    return %c0_i32, %c0_i32_0 : i32, i32
  }
  func.func @transform_3(%arg0: i32) -> (i32, i32) {
    %c0_i32 = arith.constant 0 : i32
    %c0_i32_0 = arith.constant 0 : i32
    %c0_i32_1 = arith.constant 0 : i32
    return %c0_i32, %c0_i32_0 : i32, i32
  }
  func.func @transform_4(%arg0: i32) -> (i32, i32) {
    %c0_i32 = arith.constant 0 : i32
    %c0_i32_0 = arith.constant 0 : i32
    %c0_i32_1 = arith.constant 0 : i32
    return %c0_i32, %c0_i32_0 : i32, i32
  }
  func.func @transform_5(%arg0: i32) -> (i32, i32) {
    %c0_i32 = arith.constant 0 : i32
    %c0_i32_0 = arith.constant 0 : i32
    %c0_i32_1 = arith.constant 0 : i32
    return %c0_i32, %c0_i32_0 : i32, i32
  }
  func.func @transform_6(%arg0: i32) -> (i32, i32) {
    %c0_i32 = arith.constant 0 : i32
    %c0_i32_0 = arith.constant 0 : i32
    return %arg0, %c0_i32 : i32, i32
  }
}

</mosaic_0001>

<bundles_post_ra>
// kernel: tpu_custom_call.1
= control target key start
LH: loop header
LB: loop body
LE: loop exit
PB: predicated region body
PF: predicated region fallthrough
CT: control target
= control target key end

     0   :  { %11 = vsyncpa [#allocation3], 0  ;;  %s950_s0 = inlined_call_operand.hbm [shape: f32[16,32], index: 0, kind: input, shape index: {}]   ;;  %s951_s1 = inlined_call_operand.hbm [shape: f32[16,32], index: 1, kind: input, shape index: {}]   ;;  %s952_s2 = inlined_call_operand.vmem [shape: f32[1,32], index: 2, kind: input, shape index: {}]   ;;  %s953_s3 = inlined_call_operand.vmem [shape: f32[1,32], index: 3, kind: input, shape index: {}]   ;;  %s954_s4 = inlined_call_operand.vmem [shape: f32[1,32], index: 4, kind: input, shape index: {}]   ;;  %s955_s5 = inlined_call_operand.vmem [shape: f32[1,32], index: 5, kind: input, shape index: {}]   ;;  %s956_s6 = inlined_call_operand.hbm [shape: f32[16,32], index: 6, kind: output, shape index: {}]  }
   0x1   :  { %13 = vsyncpa [#allocation3 + $0x1], 0 }
   0x2   :  { %14 = vsyncpa [#allocation6], 0 }
   0x3   :  { %16 = vsyncpa [#allocation6 + $0x1], 0 }
   0x4   :  { %17 = vsyncpa [#allocation4], 0 }
   0x5   :  { %19 = vsyncpa [#allocation4 + $0x1], 0  ;;  %s719_s21 = smov 0   ;;  %s721_s22 = smov 0  }
   0x6   :  { %s723_s23 = smov 0   ;;  %s725_s24 = smov 0  }
   0x7 LB: > { %s740_s25 = sadd.s32 4294967295, %s679_s24   ;;  %s475_s26 = sadd.s32 4294967294, %s679_s24   ;;  %s679_s24 = sphi %s725_s24, %s975_s24   ;;  %s675_s23 = sphi %s723_s23, %s974_s23   ;;  %s671_s22 = sphi %s721_s22, %s973_s22   ;;  %s667_s21 = sphi %s719_s21, %s972_s21  }
   0x8   : > { %s744_s27 = sadd.s32 1, %s679_s24   ;;  %s32_s28 = sadd.s32 1, %s675_s23 }
   0x9   : > { %s29_s29 = ssub.s32 %s679_s24, %s744_s27  ;;  %p39_p0 = scmp.ne.s32.totalorder %s675_s23, %s671_s22 }
   0xa   : > { %p30_p1 = scmp.eq.s32.totalorder %s29_s29, 0  ;;  %p40_p2 = scmp.eq.s32.totalorder %s679_s24, 0 }
   0xb   : > { %p45_p3 = scmp.ne.s32.totalorder %s671_s22, %s667_s21  ;;  %p46_p4 = scmp.eq.s32.totalorder %s740_s25, 0 }
   0xc   : > { %s756_s30 = scalar_select %p30_p1, %s675_s23, %s32_s28  }
   0xd   : > { %p758_p5 = por %p40_p2, %p39_p0  ;;  %p762_p6 = por %p46_p4, %p45_p3 }
   0xe   : > { %p179_p7 = scmp.eq.s32.totalorder %s740_s25, 1  ;;  %p185_p8 = scmp.eq.s32.totalorder %s475_s26, 1 }
   0xf   : > { %s960_s8 = scalar_select %p762_p6, 1, 0 }
  0x10   : > { %p511_p10 = scmp.lt.s32.totalorder %s679_s24, 2  ;;  %p769_p11 = por %p179_p7, %p39_p0 }
  0x11   : > { %p773_p12 = por %p185_p8, %p45_p3  ;;  %s778_s11 = sand.u32 1, %s675_s23  }
  0x12   : > { %s961_s9 = scalar_select %p769_p11, 1, 0 }
  0x13   : > { %s962_s10 = scalar_select %p773_p12, 1, 0 }
  0x14   : > { %s479_s12 = sshll.u32 %s679_s24, 7  ;;  %s478_s13 = sshll.u32 %s778_s11, 3 }
  0x15   : > { %s787_s16 = scalar_lea.hbm %s950_s0, %s479_s12  ;;  %s221_s17 = scalar_lea.vmem [#allocation2], %s478_s13 }
  0x16   : > { %s228_s18 = sshll.u32 %s221_s17, 4  ;;  %p793_p13 = pnand %p511_p10, %p758_p5  ;;  %s797_s18 = int_to_ptr.vmem [resolvable:$true] %s228_s18 }
  0x17   : > { %s218_s20 = scalar_lea.sflag [#allocation3], %s778_s11  ;;  %s549_s26 = scalar_lea.hbm %s787_s16, 128 }
  0x18   : > { %p550_p2 = scmp.ne.s32.totalorder %s787_s16, %s549_s26  ;;  %p551_p3 = pneg %p793_p13 }
  0x19   : > { %s554_s7 = scalar_lea.hbm %s950_s0, 256  ;;  %p555_p5 = scmp.lt.u32.totalorder %s787_s16, %s950_s0 }
  0x1a   : > { %p552_p4 = pnand %p551_p3, %p550_p2  ;;  %p556_p8 = scmp.lt.u32.totalorder %s554_s7, %s549_s26 }
  0x1b   : > { %p558_p9 = scmp.lt.u32.totalorder %s549_s26, %s787_s16 }
  0x1c   : > { %p553_p7 = pneg %p552_p4  ;;  %p557_p10 = por %p556_p8, %p555_p5 }
  0x1e   : > { %p559_p0 = por %p558_p9, %p557_p10 }
  0x20   : > { %p560_p1 = pnand %p559_p0, %p553_p7 }
  0x22   : > { %563 = shalt.err (!%p560_p1)
}
  0x23   : > { %s564_s17 = scalar_lea.vmem %s797_s18, 128  ;;  %s681_s28 = smov [#allocation2]  }
  0x24   : > { %p565_p2 = scmp.ne.s32.totalorder %s797_s18, %s564_s17  ;;  %s569_s29 = sshll.u32 %s681_s28, 4  ;;  %s570_s29 = int_to_ptr.vmem [resolvable:$false] %s569_s29 }
  0x25   : > { %s571_s14 = scalar_lea.vmem %s570_s29, 256  ;;  %p572_p11 = scmp.lt.s32.totalorder %s797_s18, %s570_s29 }
  0x26   : > { %p567_p4 = pnand %p565_p2, %p551_p3  ;;  %p573_p5 = scmp.lt.s32.totalorder %s571_s14, %s564_s17 }
  0x28   : > { %p568_p12 = pneg %p567_p4  ;;  %p574_p8 = por %p573_p5, %p572_p11 }
  0x2a   : > { %p575_p9 = pnand %p574_p8, %p568_p12 }
  0x2c   : > { %578 = shalt.err (!%p575_p9)
}
  0x2d   : > { %503 = dma.hbm_to_vmem [thread:$0]  (!%p793_p13), %s787_s16, 128, %s797_s18, %s218_s20  }
  0x2e   : > { %p964_p0 = scmp.lt.s32.totalorder %s679_s24, 3  ;;  %p965_p1 = scmp.ge.s32.totalorder %s679_s24, 1 }
  0x2f   : > { %s840_s17 = scalar_lea.hbm %s951_s1, %s479_s12  ;;  %s239_s28 = scalar_lea.vmem [#allocation5], %s478_s13 }
  0x30   : > { %p831_p7 = pnand %p965_p1, %p964_p0  ;;  %s246_s29 = sshll.u32 %s239_s28, 4  ;;  %s247_s29 = int_to_ptr.vmem [resolvable:$true] %s246_s29 }
  0x31   : > { %s236_s16 = scalar_lea.sflag [#allocation6], %s778_s11  ;;  %s579_s18 = scalar_lea.hbm %s840_s17, 128 }
  0x32   : > { %s966_s26 = scalar_select %p831_p7, 1, 0 }
  0x33   : > { %p580_p11 = scmp.ne.s32.totalorder %s840_s17, %s579_s18  ;;  %s584_s12 = scalar_lea.hbm %s951_s1, 256 }
  0x34   : > { %p585_p2 = scmp.lt.u32.totalorder %s840_s17, %s951_s1  ;;  %p586_p4 = scmp.lt.u32.totalorder %s584_s12, %s579_s18 }
  0x35   : > { %p582_p12 = pnand %p580_p11, %p551_p3  ;;  %p588_p8 = scmp.lt.u32.totalorder %s579_s18, %s840_s17 }
  0x36   : > { %p587_p5 = por %p586_p4, %p585_p2 }
  0x37   : > { %p583_p10 = pneg %p582_p12 }
  0x38   : > { %p589_p9 = por %p588_p8, %p587_p5 }
  0x3a   : > { %p590_p0 = pnand %p589_p9, %p583_p10 }
  0x3c   : > { %593 = shalt.err (!%p590_p0)
}
  0x3d   : > { %s594_s11 = scalar_lea.vmem %s247_s29, 128  ;;  %s682_s13 = smov [#allocation5]  }
  0x3e   : > { %p595_p1 = scmp.ne.s32.totalorder %s247_s29, %s594_s11  ;;  %s599_s28 = sshll.u32 %s682_s13, 4  ;;  %s600_s28 = int_to_ptr.vmem [resolvable:$false] %s599_s28 }
  0x3f   : > { %s601_s20 = scalar_lea.vmem %s600_s28, 256  ;;  %p602_p6 = scmp.lt.s32.totalorder %s247_s29, %s600_s28 }
  0x40   : > { %p597_p11 = pnand %p595_p1, %p551_p3  ;;  %p603_p7 = scmp.lt.s32.totalorder %s601_s20, %s594_s11 }
  0x42   : > { %p598_p12 = pneg %p597_p11  ;;  %p604_p2 = por %p603_p7, %p602_p6 }
  0x44   : > { %p605_p4 = pnand %p604_p2, %p598_p12 }
  0x46   : > { %608 = shalt.err (!%p605_p4)
}
  0x47   : > { %506 = dma.hbm_to_vmem [thread:$0]  (!%p793_p13), %s840_s17, 128, %s247_s29, %s236_s16  }
  0x48   : > { %p967_p10 = scmp.ne.s32.totalorder %s966_s26, 0 }
  0x49   : > { %s867_s18 = sand.u32 (!%p967_p10), 1, %s671_s22   ;;  %p968_p6 = scmp.ne.s32.totalorder (!%p967_p10), %s960_s8, 0 }
  0x4a   : > { %255 = sbr.rel (%p967_p10) target bundleno = 418 (0x1a2), region = 44  ;;  %s870_s14 = sshll.u32 (!%p967_p10), %s867_s18, 3 }
  0x4b   : > { %s258_s12 = scalar_lea.sflag (!%p967_p10), [#allocation3], %s867_s18  ;;  %s261_s7 = scalar_lea.vmem (!%p967_p10), [#allocation2], %s870_s14 }
  0x51   : > { %654 = dma.done.wait (%p968_p6), %s258_s12, 128  }
  0x52   : > { %656 = vsyncadd (%p968_p6), %s258_s12, 4294967168  ;;  %s267_s19 = scalar_lea.sflag [#allocation6], %s867_s18  ;;  %s270_s26 = scalar_lea.vmem [#allocation5], %s870_s14 }
  0x53   : > { %658 = dma.done.wait (%p968_p6), %s267_s19, 128  }
  0x54   : > { %660 = vsyncadd (%p968_p6), %s267_s19, 4294967168  ;;  %vm307_vm0 = vcmask 261120   ;;  %v304_v0 = vld [vmem:[%s261_s7] sm:$0xff]  ;;  %v336_v1 = vld [vmem:[%s270_s26] sm:$0xff]  ;;  %s491_s20 = sshll.u32 %s740_s25, 7  ;;  %s303_s12 = scalar_lea.vmem [#allocation7], %s870_s14 }
  0x55   : > { %v308_v2 = vsel %vm307_vm0, %v304_v0, 0.0  ;;  %v339_v3 = vsel %vm307_vm0, %v336_v1, 0.0  ;;  %v486_v20 = vld [vmem:[%s952_s2] ss:$0 sm:$0xff]  ;;  %s382_s7 = sshll.u32 %s303_s12, 4  ;;  %s905_s8 = scalar_lea.hbm %s956_s6, %s491_s20  ;;  %s907_s7 = int_to_ptr.vmem [resolvable:$true] %s382_s7 }
  0x56   : > { %309 = vadd.xlane.f32.xlu0 %v308_v2  ;;  %v488_v23 = vld [vmem:[%s954_s4] ss:$0 sm:$0xff]  ;;  %s369_s17 = scalar_lea.sflag [#allocation4], %s867_s18  ;;  %s609_s29 = scalar_lea.vmem %s907_s7, 128 }
  0x57   : > { %v487_v27 = vld [vmem:[%s953_s3] ss:$0 sm:$0xff]  ;;  %p610_p13 = scmp.ne.s32.totalorder %s907_s7, %s609_s29  ;;  %p969_p3 = scmp.ne.s32.totalorder %s961_s9, 0 }
  0x58   : > { %v489_v28 = vld [vmem:[%s955_s5] ss:$0 sm:$0xff]  ;;  %s683_s25 = smov [#allocation7]  }
  0x59   : > { %p611_p7 = pnand %p610_p13, %p969_p3  ;;  %s613_s14 = sshll.u32 %s683_s25, 4  ;;  %s614_s14 = int_to_ptr.vmem [resolvable:$false] %s613_s14 }
  0x5a   : > { %340 = vadd.xlane.f32.xlu0 %v339_v3  ;;  %s615_s16 = scalar_lea.vmem %s614_s14, 256  ;;  %p616_p8 = scmp.lt.s32.totalorder %s907_s7, %s614_s14 }
  0x5b   : > { %p612_p5 = pneg %p611_p7  ;;  %p617_p9 = scmp.lt.s32.totalorder %s615_s16, %s609_s29 }
  0x5d   : > { %p618_p0 = por %p617_p9, %p616_p8 }
  0x5f   : > { %p619_p1 = pnand %p618_p0, %p612_p5 }
  0xe3   : > { %v310_v4 = vpop.xlane.xlu0 %309 }
  0xe4   : > { %v312_v5 = vmul.f32 0.03125, %v310_v4 }
  0xe6   : > { %v313_v6 = vsub.f32 %v304_v0, %v312_v5 }
  0xe7   : > { %v341_v7 = vpop.xlane.xlu0 %340 }
  0xe8   : > { %v342_v8 = vmul.f32 0.03125, %v341_v7  ;;  %v314_v9 = vmul.f32 %v313_v6, %v313_v6 }
  0xea   : > { %v343_v10 = vsub.f32 %v336_v1, %v342_v8  ;;  %v315_v11 = vsel %vm307_vm0, %v314_v9, 0.0 }
  0xeb   : > { %316 = vadd.xlane.f32.xlu1 %v315_v11 }
  0xec   : > { %v344_v12 = vmul.f32 %v343_v10, %v343_v10 }
  0xee   : > { %v345_v13 = vsel %vm307_vm0, %v344_v12, 0.0 }
  0xef   : > { %346 = vadd.xlane.f32.xlu1 %v345_v13 }
 0x178   : > { %v317_v14 = vpop.xlane.xlu1 %316 }
 0x179   : > { %v318_v15 = vmul.f32 0.03125, %v317_v14 }
 0x17b   : > { %v319_v16 = vadd.f32 1e-05, %v318_v15 }
 0x17c   : > { %v347_v17 = vpop.xlane.xlu1 %346 }
 0x17d   : > { %545 = vrsqrt.f32 %v319_v16  ;;  %v348_v18 = vmul.f32 0.03125, %v347_v17 }
 0x17f   : > { %v349_v19 = vadd.f32 1e-05, %v348_v18 }
 0x181   : > { %547 = vrsqrt.f32 %v349_v19 }
 0x187   : > { %v546_v21 = vpop.eup %545 }
 0x188   : > { %v327_v22 = vmul.f32 %v546_v21, %v486_v20 }
 0x18a   : > { %v328_v25 = vmul.f32 %v327_v22, %v313_v6 }
 0x18b   : > { %v548_v24 = vpop.eup %547 }
 0x18c   : > { %v357_v26 = vmul.f32 %v548_v24, %v488_v23  ;;  %v335_v30 = vadd.f32 %v487_v27, %v328_v25 }
 0x18e   : > { %v358_v29 = vmul.f32 %v357_v26, %v343_v10 }
 0x190   : > { %v365_v31 = vadd.f32 %v489_v28, %v358_v29 }
 0x192   : > { %v366_v32 = vadd.f32 %v365_v31, %v335_v30 }
 0x194   : > { %367 = vst.msk [vmem:[%s303_s12] sm:$0xff] %vm307_vm0, %v366_v32 }
 0x195   : > { %622 = shalt.err (!%p619_p1)
}
 0x196   : > { %s623_s18 = scalar_lea.hbm %s905_s8, 128  ;;  %s627_s13 = scalar_lea.hbm %s956_s6, 256 }
 0x197   : > { %p624_p11 = scmp.ne.s32.totalorder %s905_s8, %s623_s18  ;;  %p628_p4 = scmp.lt.u32.totalorder %s905_s8, %s956_s6 }
 0x198   : > { %p629_p10 = scmp.lt.u32.totalorder %s627_s13, %s623_s18  ;;  %p631_p13 = scmp.lt.u32.totalorder %s623_s18, %s905_s8 }
 0x199   : > { %p625_p12 = pnand %p624_p11, %p969_p3 }
 0x19a   : > { %p630_p6 = por %p629_p10, %p628_p4 }
 0x19b   : > { %p626_p2 = pneg %p625_p12 }
 0x19c   : > { %p632_p7 = por %p631_p13, %p630_p6 }
 0x19e   : > { %p633_p5 = pnand %p632_p7, %p626_p2 }
 0x1a0   : > { %636 = shalt.err (!%p633_p5)
}
 0x1a1   : > { %498 = dma.vmem_to_hbm [thread:$0]  (%p969_p3), %s907_s7, 128, %s905_s8, %s369_s17  }
 0x1a2 PF: > { %s394_s12 = sand.u32 1, %s667_s21   ;;  %p970_p8 = scmp.ne.s32.totalorder %s962_s10, 0 }
 0x1a3   : > { %p971_p9 = scmp.ge.s32.totalorder %s679_s24, 2  ;;  %s395_s19 = scalar_lea.sflag [#allocation4], %s394_s12 }
 0x1a5   : > { %p508_p0 = pnand %p971_p9, %p970_p8 }
 0x1a7   : > { %662 = dma.done.wait (!%p508_p0), %s395_s19, 128  }
 0x1a8   : > { %664 = vsyncadd (!%p508_p0), %s395_s19, 4294967168  ;;  %p22_p1 = scmp.ge.s32.totalorder %s744_s27, 4   ;;  %s972_s21 = smov %s671_s22 }
 0x1a9   : > { %s973_s22 = smov %s675_s23  ;;  %s974_s23 = smov %s756_s30 }
 0x1aa   : > { %s975_s24 = smov %s744_s27  ;;  %24 = sbr.rel (!%p22_p1) target bundleno = 7 (0x7), region = 102 }
 0x1b1   :  { %400 = vsyncpa [#allocation3], 1 }
 0x1b2   :  { %402 = vsyncpa [#allocation3 + $0x1], 1 }
 0x1b3   :  { %403 = vsyncpa [#allocation6], 1 }
 0x1b4   :  { %405 = vsyncpa [#allocation6 + $0x1], 1 }
 0x1b5   :  { %406 = vsyncpa [#allocation4], 1 }
 0x1b6   :  { %408 = vsyncpa [#allocation4 + $0x1], 1 }

</bundles_post_ra>
